<compile_context>
chip_gen: v5e
topology: v5e:2x2
jax: 0.10.0
libtpu: 0.0.40
codegen_flags: <defaults>
</compile_context>

<pallas_src>
import functools

import jax
import jax.numpy as jnp
from jax import lax
from jax.experimental import pallas as pl
from jax.experimental.pallas import tpu as pltpu

_BN_EPS = 1e-5


# --------------------------------------------------------------------------
# VMEM budget / tile selection (generation aware)
# --------------------------------------------------------------------------
def _vmem_budget_bytes():
    """~3/4 of physical VMEM, clamped to [32 MiB, 100 MiB].

    v7x: 64 MiB physical -> ~48 MiB budget; v5e/v6e: 128 MiB -> 100 MiB budget.
    Falls back to the most conservative assumption (v7x) if the query fails.
    """
    cap = 64 * 1024 * 1024
    try:
        info = pltpu.get_tpu_info()
        cap = int(getattr(info, "vmem_capacity_bytes", cap))
    except Exception:
        pass
    return int(min(max(cap * 3 // 4, 32 * 1024 * 1024), 100 * 1024 * 1024))


def _choose_tiles(B, C, HW, itemsize, budget):
    """Pick (bt, ts, hw_pad).

    ts: spatial tile, a multiple of 128 dividing hw_pad (= HW rounded up to a
        multiple of 128 so stores stay unmasked).
    bt: batch rows per block.
    Block bytes target ~budget/8 so double-buffered input + output of the
    gridded kernels stay well under the VMEM budget while blocks are still
    multi-MB at production sizes (per-grid-step overhead amortized).
    """
    hw128 = ((HW + 127) // 128) * 128
    k = hw128 // 128
    elem = max(int(itemsize), 4)              # account for the f32 compute copy
    target = max(512 * 1024, budget // 8)
    max_d = max(1, target // (C * 128 * elem))
    d = 1
    for cand in range(min(k, max_d), 0, -1):
        if k % cand == 0:
            d = cand
            break
    ts = 128 * d
    block_bytes = C * ts * elem
    bt = 1
    for cand in range(B, 0, -1):
        if B % cand == 0 and cand * block_bytes <= max(target, block_bytes):
            bt = cand
            break
    return bt, ts, hw128


# --------------------------------------------------------------------------
# Kernels
# --------------------------------------------------------------------------
def se_reduce_kernel(x_ref, sum_ref, sqsum_ref):
    """Gridded per-(b,c) lane reductions: sum(x), sum(x^2).

    x_ref: (bt, C, ts) input tile (input dtype, upcast here).
    sum_ref / sqsum_ref: (bt, C) f32 resident accumulators across the spatial
    grid axis (same output block for every spatial step).
    """
    @pl.when(pl.program_id(1) == 0)
    def _():
        sum_ref[...] = jnp.zeros_like(sum_ref)
        sqsum_ref[...] = jnp.zeros_like(sqsum_ref)

    x = x_ref[...].astype(jnp.float32)
    sum_ref[...] += jnp.sum(x, axis=-1)
    sqsum_ref[...] += jnp.sum(x * x, axis=-1)


def se_excite_kernel(sum_ref, sqsum_ref, p_ref, scale_ref, shift_ref, *,
                     inv_hw, inv_n):
    """Tiny ungridded kernel: avg-pool + FC + sigmoid + analytic BN stats.

    sum_ref/sqsum_ref: (B, C) f32; p_ref: (2*Cr+2, C) packed [W1^T; W2; gamma; beta].
    scale_ref: (B, C)  combined per-(b,c) multiplier  s[b,c]*gamma_c*inv_std_c
    shift_ref: (1, C)  per-channel shift              beta_c - mean_c*gamma_c*inv_std_c
    """
    sum_hw = sum_ref[...]
    sqsum_hw = sqsum_ref[...]
    params = p_ref[...]
    Cr = (params.shape[0] - 2) // 2
    w1t = params[0:Cr, :]                        # (Cr, C) = W1^T
    w2 = params[Cr:2 * Cr, :]                    # (Cr, C)
    gamma = params[2 * Cr:2 * Cr + 1, :]         # (1, C)
    beta = params[2 * Cr + 1:2 * Cr + 2, :]      # (1, C)

    y = sum_hw * inv_hw                          # (B, C) avg pool
    h = jnp.maximum(
        lax.dot_general(y, w1t, (((1,), (1,)), ((), ())),
                        preferred_element_type=jnp.float32), 0.0)          # (B, Cr)
    s = jax.nn.sigmoid(jnp.dot(h, w2, preferred_element_type=jnp.float32))  # (B, C)

    sum_xs = jnp.sum(s * sum_hw, axis=0, keepdims=True)          # (1, C)
    sum_xs2 = jnp.sum(s * s * sqsum_hw, axis=0, keepdims=True)   # (1, C)
    mean_c = sum_xs * inv_n
    var_c = sum_xs2 * inv_n - mean_c * mean_c                    # biased
    inv_c = lax.rsqrt(var_c + _BN_EPS)

    bn_scale = gamma * inv_c
    scale_ref[...] = s * bn_scale
    shift_ref[...] = beta - mean_c * bn_scale


def se_apply_kernel(x_ref, scale_ref, shift_ref, o_ref):
    """out = x * scale[b, c] + shift[c] on one (bt, C, ts) lane-dense block."""
    x = x_ref[...].astype(jnp.float32)           # (bt, C, ts)
    scale = scale_ref[...][:, :, None]           # (bt, C, 1)  (row picked by index_map)
    shift = shift_ref[...][:, :, None]           # (1, C, 1)
    o_ref[...] = (x * scale + shift).astype(o_ref.dtype)


def se_fused_kernel(x_ref, p_ref, o_ref, *, inv_hw, inv_n):
    """Fast path: x resident in VMEM; one HBM read + one HBM write of x."""
    x = x_ref[...].astype(jnp.float32)           # (B, C, HWp)
    params = p_ref[...]
    Cr = (params.shape[0] - 2) // 2
    w1t = params[0:Cr, :]
    w2 = params[Cr:2 * Cr, :]
    gamma = params[2 * Cr:2 * Cr + 1, :]
    beta = params[2 * Cr + 1:2 * Cr + 2, :]

    sum_hw = jnp.sum(x, axis=-1)                 # (B, C)
    sqsum_hw = jnp.sum(x * x, axis=-1)           # (B, C)

    y = sum_hw * inv_hw
    h = jnp.maximum(
        lax.dot_general(y, w1t, (((1,), (1,)), ((), ())),
                        preferred_element_type=jnp.float32), 0.0)
    s = jax.nn.sigmoid(jnp.dot(h, w2, preferred_element_type=jnp.float32))

    sum_xs = jnp.sum(s * sum_hw, axis=0, keepdims=True)
    sum_xs2 = jnp.sum(s * s * sqsum_hw, axis=0, keepdims=True)
    mean_c = sum_xs * inv_n
    var_c = sum_xs2 * inv_n - mean_c * mean_c
    inv_c = lax.rsqrt(var_c + _BN_EPS)

    bn_scale = gamma * inv_c                     # (1, C)
    scale = s * bn_scale                         # (B, C)
    shift = beta - mean_c * bn_scale             # (1, C)
    o_ref[...] = (x * scale[:, :, None] + shift[:, :, None]).astype(o_ref.dtype)


# --------------------------------------------------------------------------
# Wrapper
# --------------------------------------------------------------------------
def se_layer(x_nchw, w1, w2, gamma, beta, *, force_two_pass=False):
    B, C, H, W = x_nchw.shape
    HW = H * W
    dtype = x_nchw.dtype
    itemsize = jnp.dtype(dtype).itemsize

    budget = _vmem_budget_bytes()
    bt, ts, hw_pad = _choose_tiles(B, C, HW, itemsize, budget)

    x3 = x_nchw.reshape(B, C, HW)
    if hw_pad != HW:
        # Keep every block lane-dense (unmasked vst); zeros don't perturb the sums.
        x3 = jnp.pad(x3, ((0, 0), (0, 0), (0, hw_pad - HW)))

    # Pack the four tiny parameter arrays into one lane-dense slab -> one DMA.
    params = jnp.concatenate(
        [w1.T, w2, gamma.reshape(1, C), beta.reshape(1, C)], axis=0
    ).astype(jnp.float32)                                        # (2*Cr+2, C)

    inv_hw = 1.0 / float(HW)
    inv_n = 1.0 / float(B * HW)

    vmem = pl.BlockSpec(memory_space=pltpu.MemorySpace.VMEM)

    # Fused single-pass path when x (in f32 working form) fits the budget with
    # room for the output block and temporaries.
    x_f32_bytes = B * C * hw_pad * 4
    fuse_ok = (not force_two_pass) and (4 * x_f32_bytes + (4 << 20) <= budget)

    if fuse_ok:
        out3 = pl.pallas_call(
            functools.partial(se_fused_kernel, inv_hw=inv_hw, inv_n=inv_n),
            out_shape=jax.ShapeDtypeStruct((B, C, hw_pad), dtype),
            in_specs=[vmem, vmem],
            out_specs=vmem,
            compiler_params=pltpu.CompilerParams(vmem_limit_bytes=budget),
        )(x3, params)
    else:
        grid = (B // bt, hw_pad // ts)

        # ---- pass 1: gridded per-(b,c) sum / sum-of-squares ----------------
        sum_bc, sqsum_bc = pl.pallas_call(
            se_reduce_kernel,
            out_shape=(jax.ShapeDtypeStruct((B, C), jnp.float32),
                       jax.ShapeDtypeStruct((B, C), jnp.float32)),
            grid=grid,
            in_specs=[pl.BlockSpec((bt, C, ts), lambda b, s: (b, 0, s))],
            out_specs=(pl.BlockSpec((bt, C), lambda b, s: (b, 0)),
                       pl.BlockSpec((bt, C), lambda b, s: (b, 0))),
            compiler_params=pltpu.CompilerParams(
                dimension_semantics=("parallel", "arbitrary"),
                vmem_limit_bytes=budget),
        )(x3)

        # ---- pass 1b: tiny FC + analytic BN stats ---------------------------
        scale_bc, shift_c = pl.pallas_call(
            functools.partial(se_excite_kernel, inv_hw=inv_hw, inv_n=inv_n),
            out_shape=(jax.ShapeDtypeStruct((B, C), jnp.float32),
                       jax.ShapeDtypeStruct((1, C), jnp.float32)),
            in_specs=[vmem, vmem, vmem],
            out_specs=(vmem, vmem),
            compiler_params=pltpu.CompilerParams(vmem_limit_bytes=budget),
        )(sum_bc, sqsum_bc, params)

        # ---- pass 2: gridded rescale + BN apply ------------------------------
        out3 = pl.pallas_call(
            se_apply_kernel,
            out_shape=jax.ShapeDtypeStruct((B, C, hw_pad), dtype),
            grid=grid,
            in_specs=[
                pl.BlockSpec((bt, C, ts), lambda b, s: (b, 0, s)),
                pl.BlockSpec((bt, C), lambda b, s: (b, 0)),
                pl.BlockSpec((1, C), lambda b, s: (0, 0)),
            ],
            out_specs=pl.BlockSpec((bt, C, ts), lambda b, s: (b, 0, s)),
            compiler_params=pltpu.CompilerParams(
                dimension_semantics=("parallel", "parallel"),
                vmem_limit_bytes=budget),
        )(x3, scale_bc, shift_c)

    if hw_pad != HW:
        out3 = out3[:, :, :HW]
    return out3.reshape(B, C, H, W)


def se_layer_ref(x, w1, w2, gamma, beta, eps=_BN_EPS):
    """Pure-JAX reference (PyTorch SELayer forward, training-mode BN)."""
    y = x.mean(axis=(2, 3))                                   # (B, C)
    h = jnp.maximum(y @ w1, 0.0)
    s = jax.nn.sigmoid(h @ w2)                                # (B, C)
    xs = x * s[:, :, None, None]
    mean = xs.mean(axis=(0, 2, 3))
    var = xs.var(axis=(0, 2, 3))                              # biased
    inv = lax.rsqrt(var + eps)
    return ((xs - mean[None, :, None, None]) * inv[None, :, None, None]
            * gamma[None, :, None, None] + beta[None, :, None, None])


if __name__ == "__main__":
    # SELayer(channel=64, reduction=16) -> hidden = 4 ; spatial 16x16 (HW=256,
    # already a multiple of 128 so no padding is needed here).
    B, C, H, W = 2, 64, 16, 16
    reduction = 16
    Cr = C // reduction

    key = jax.random.PRNGKey(0)
    kx, k1, k2 = jax.random.split(key, 3)

    x = jax.random.normal(kx, (B, C, H, W), dtype=jnp.float32)

    # fc weights (bias-free), stored already-transposed relative to PyTorch
    # nn.Linear.weight so the math is y @ W1 and h @ W2.
    w1 = jax.random.normal(k1, (C, Cr), dtype=jnp.float32) * 0.05   # Linear(C -> C//r)
    w2 = jax.random.normal(k2, (Cr, C), dtype=jnp.float32) * 0.05   # Linear(C//r -> C)

    # BatchNorm2d affine params at fresh init.
    gamma = jnp.ones((C,), dtype=jnp.float32)
    beta = jnp.zeros((C,), dtype=jnp.float32)

    ref = se_layer_ref(x, w1, w2, gamma, beta)

    # Default path (fused: x fits VMEM at this size).
    out = se_layer(x, w1, w2, gamma, beta)
    jax.block_until_ready(out)
    assert out.shape == (B, C, H, W)
    err_fused = float(jnp.max(jnp.abs(out - ref)))
    assert err_fused < 2e-3, f"fused path max abs error vs reference: {err_fused}"

    # Also exercise the scalable two-pass gridded path.
    out2 = se_layer(x, w1, w2, gamma, beta, force_two_pass=True)
    jax.block_until_ready(out2)
    err_tiled = float(jnp.max(jnp.abs(out2 - ref)))
    assert err_tiled < 2e-3, f"two-pass path max abs error vs reference: {err_tiled}"

    print("KERNEL_OK")
</pallas_src>

<mosaic_0001>
module attributes {stable_mosaic.version = 11 : i64} {
  func.func @se_fused_kernel(%arg0: memref<2x64x256xf32, #tpu.memory_space<vmem>>, %arg1: memref<10x64xf32, #tpu.memory_space<vmem>>, %arg2: memref<2x64x256xf32, #tpu.memory_space<vmem>>) attributes {dimension_semantics = [], scalar_prefetch = 0 : i64, scratch_operands = 0 : i64, tpu.core_type = #tpu.core_type<tc>} {
    %c0 = arith.constant 0 : index
    %c0_0 = arith.constant 0 : index
    %c0_1 = arith.constant 0 : index
    %0 = vector.load %arg0[%c0, %c0_0, %c0_1] : memref<2x64x256xf32, #tpu.memory_space<vmem>>, vector<2x64x256xf32>
    %c0_2 = arith.constant 0 : index
    %c0_3 = arith.constant 0 : index
    %1 = vector.load %arg1[%c0_2, %c0_3] : memref<10x64xf32, #tpu.memory_space<vmem>>, vector<10x64xf32>
    %2 = vector.extract_strided_slice %1 {offsets = [0, 0], sizes = [4, 64], strides = [1, 1]} : vector<10x64xf32> to vector<4x64xf32>
    %3 = vector.extract_strided_slice %1 {offsets = [4, 0], sizes = [4, 64], strides = [1, 1]} : vector<10x64xf32> to vector<4x64xf32>
    %4 = vector.extract_strided_slice %1 {offsets = [8, 0], sizes = [1, 64], strides = [1, 1]} : vector<10x64xf32> to vector<1x64xf32>
    %5 = vector.extract_strided_slice %1 {offsets = [9, 0], sizes = [1, 64], strides = [1, 1]} : vector<10x64xf32> to vector<1x64xf32>
    %cst = arith.constant dense<0.000000e+00> : vector<2x64xf32>
    %6 = vector.multi_reduction <add>, %0, %cst [2] : vector<2x64x256xf32> to vector<2x64xf32>
    %7 = arith.mulf %0, %0 : vector<2x64x256xf32>
    %cst_4 = arith.constant dense<0.000000e+00> : vector<2x64xf32>
    %8 = vector.multi_reduction <add>, %7, %cst_4 [2] : vector<2x64x256xf32> to vector<2x64xf32>
    %cst_5 = arith.constant 3.906250e-03 : f32
    %9 = vector.broadcast %cst_5 : f32 to vector<2x64xf32>
    %10 = arith.mulf %6, %9 : vector<2x64xf32>
    %cst_6 = arith.constant dense<0.000000e+00> : vector<2x4xf32>
    %11 = tpu.matmul %10, %2, %cst_6 {dimension_numbers = #tpu.dot_dimension_numbers<[1], [1], [0], [0], [0, 0, 1, 0], [], []>} : vector<2x64xf32>, vector<4x64xf32>, vector<2x4xf32> -> vector<2x4xf32>
    %cst_7 = arith.constant 0.000000e+00 : f32
    %12 = vector.broadcast %cst_7 : f32 to vector<2x4xf32>
    %13 = arith.maximumf %11, %12 : vector<2x4xf32>
    %cst_8 = arith.constant dense<0.000000e+00> : vector<2x64xf32>
    %14 = tpu.matmul %13, %3, %cst_8 {dimension_numbers = #tpu.dot_dimension_numbers<[1], [0], [0], [1], [0, 0, 1, 1], [], []>} : vector<2x4xf32>, vector<4x64xf32>, vector<2x64xf32> -> vector<2x64xf32>
    %15 = arith.negf %14 : vector<2x64xf32>
    %16 = math.exp %15 : vector<2x64xf32>
    %cst_9 = arith.constant 1.000000e+00 : f32
    %17 = vector.broadcast %cst_9 : f32 to vector<2x64xf32>
    %18 = arith.addf %17, %16 : vector<2x64xf32>
    %19 = arith.divf %17, %18 : vector<2x64xf32>
    %20 = arith.mulf %19, %6 : vector<2x64xf32>
    %cst_10 = arith.constant dense<0.000000e+00> : vector<64xf32>
    %21 = vector.multi_reduction <add>, %20, %cst_10 [0] : vector<2x64xf32> to vector<64xf32>
    %22 = vector.shape_cast %21 : vector<64xf32> to vector<1x64xf32>
    %23 = arith.mulf %19, %19 : vector<2x64xf32>
    %24 = arith.mulf %23, %8 : vector<2x64xf32>
    %cst_11 = arith.constant dense<0.000000e+00> : vector<64xf32>
    %25 = vector.multi_reduction <add>, %24, %cst_11 [0] : vector<2x64xf32> to vector<64xf32>
    %26 = vector.shape_cast %25 : vector<64xf32> to vector<1x64xf32>
    %cst_12 = arith.constant 0.001953125 : f32
    %27 = vector.broadcast %cst_12 : f32 to vector<1x64xf32>
    %28 = arith.mulf %22, %27 : vector<1x64xf32>
    %cst_13 = arith.constant 0.001953125 : f32
    %29 = vector.broadcast %cst_13 : f32 to vector<1x64xf32>
    %30 = arith.mulf %26, %29 : vector<1x64xf32>
    %31 = arith.mulf %28, %28 : vector<1x64xf32>
    %32 = arith.subf %30, %31 : vector<1x64xf32>
    %cst_14 = arith.constant 9.99999974E-6 : f32
    %33 = vector.broadcast %cst_14 : f32 to vector<1x64xf32>
    %34 = arith.addf %32, %33 : vector<1x64xf32>
    %35 = math.rsqrt %34 : vector<1x64xf32>
    %36 = arith.mulf %4, %35 : vector<1x64xf32>
    %37 = vector.broadcast %36 : vector<1x64xf32> to vector<2x64xf32>
    %38 = arith.mulf %19, %37 : vector<2x64xf32>
    %39 = arith.mulf %28, %36 : vector<1x64xf32>
    %40 = arith.subf %5, %39 : vector<1x64xf32>
    %41 = vector.shape_cast %38 : vector<2x64xf32> to vector<2x64x1xf32>
    %42 = vector.broadcast %41 : vector<2x64x1xf32> to vector<2x64x256xf32>
    %43 = arith.mulf %0, %42 : vector<2x64x256xf32>
    %44 = vector.shape_cast %40 : vector<1x64xf32> to vector<1x64x1xf32>
    %45 = vector.broadcast %44 : vector<1x64x1xf32> to vector<2x64x256xf32>
    %46 = arith.addf %43, %45 : vector<2x64x256xf32>
    %c0_15 = arith.constant 0 : index
    %c0_16 = arith.constant 0 : index
    %c0_17 = arith.constant 0 : index
    %47 = vector.load %arg2[%c0_15, %c0_16, %c0_17] : memref<2x64x256xf32, #tpu.memory_space<vmem>>, vector<2x64x256xf32>
    tpu.vector_store %arg2[%c0_15, %c0_16, %c0_17], %46 {strides = array<i32>} : memref<2x64x256xf32, #tpu.memory_space<vmem>>, vector<2x64x256xf32>,
    return
  }
}

</mosaic_0001>

<bundles_post_ra>
// kernel: tpu_custom_call.1
= control target key start
LH: loop header
LB: loop body
LE: loop exit
PB: predicated region body
PF: predicated region fallthrough
CT: control target
= control target key end

     0   :  { %7 = vsyncpa [#allocation3], 0  ;;  %s1280_s0 = inlined_call_operand.hbm [shape: f32[2,64,256], index: 0, kind: input, shape index: {}]   ;;  %s1281_s1 = inlined_call_operand.hbm [shape: f32[10,64], index: 1, kind: input, shape index: {}]   ;;  %s1282_s2 = inlined_call_operand.hbm [shape: f32[2,64,256], index: 2, kind: output, shape index: {}]  }
   0x1   :  { %8 = vsyncpa [#allocation6], 0 }
   0x2   :  { %9 = vsyncpa [#allocation4], 0  ;;  %s14_s11 = sshll.u32 %s1280_s0, 4  ;;  %s880_s12 = smov [#allocation2]   ;;  %s15_s11 = int_to_ptr.hbm [resolvable:$true] %s14_s11 }
   0x3   :  { %s16_s13 = sshll.u32 %s880_s12, 4  ;;  %s27_s16 = sshll.u32 %s1281_s1, 4  ;;  %s17_s13 = int_to_ptr.vmem [resolvable:$true] %s16_s13  ;;  %s28_s16 = int_to_ptr.hbm [resolvable:$true] %s27_s16 }
   0x4   :  { %s881_s17 = smov 256   ;;  %s882_s18 = smov 16  }
   0x5   :  { %22 = dma.hbm_to_vmem [thread:$0]  %s15_s11, 4096, %s17_s13, [#allocation3], %s881_s17, %s881_s17, %s882_s18  }
   0x6   :  { %s883_s19 = smov [#allocation5]   ;;  %s884_s21 = smov 128  }
   0x7   :  { %s29_s20 = sshll.u32 %s883_s19, 4  ;;  %s885_s0 = smov 8   ;;  %s30_s20 = int_to_ptr.vmem [resolvable:$true] %s29_s20 }
   0x8   :  { %35 = dma.hbm_to_vmem [thread:$0]  %s28_s16, 256, %s30_s20, [#allocation6], %s884_s21, %s884_s21, %s885_s0  }
   0x9   :  { %874 = dma.done.wait [#allocation3], 4096  }
   0xa   :  { %875 = vsyncadd [#allocation3], 4294963200 }
   0xb   :  { %876 = dma.done.wait [#allocation6], 256  }
   0xc   :  { %877 = vsyncadd [#allocation6], 4294967040  ;;  %v911_v0 = vld [vmem:[#allocation2 + $0x80] sm:$0xff]  ;;  %v913_v1 = vld [vmem:[#allocation2 + $0x88] sm:$0xff]  ;;  %v1283_v48 = vlaneseq  ;;  %vm243_vm0 = vcmask 130112   ;;  %vm247_vm1 = vcmask 195712  }
   0xd   :  { %v915_v2 = vld [vmem:[#allocation2] sm:$0xff]  ;;  %v102_v3 = vadd.f32 %v913_v1, %v911_v0  ;;  %v919_v4 = vld [vmem:[#allocation2 + $0x8] sm:$0xff]  ;;  %v929_v9 = vld [vmem:[#allocation2 + $0x90] sm:$0xff]  ;;  %vm286_vm2 = vcmask 523264   ;;  %vm251_vm3 = vcmask 261312   ;;  %vm255_vm4 = vcmask 326912  }
   0xe   :  { %1293 = vst [vmem:[#allocation11_spill] sm:$0xff] %v919_v4  ;;  %v921_v5 = vld [vmem:[#allocation2 + $0x20] sm:$0xff]  ;;  %v923_v6 = vld [vmem:[#allocation2 + $0x28] sm:$0xff]  ;;  %v78_v7 = vadd.f32 %v919_v4, %v915_v2  ;;  %v931_v10 = vld [vmem:[#allocation2 + $0x98] sm:$0xff]  ;;  %v1008_v52 = vand.u32 127, %v1283_v48  ;;  %vm259_vm5 = vcmask 392512  }
   0xf   :  { %v84_v8 = vadd.f32 %v923_v6, %v921_v5  ;;  %103 = vadd.xlane.f32.xlu1 %v102_v3  ;;  %v933_v11 = vld [vmem:[#allocation2 + $0x10] sm:$0xff]  ;;  %v935_v12 = vld [vmem:[#allocation2 + $0x18] sm:$0xff]  ;;  %v937_v13 = vld [vmem:[#allocation2 + $0xa0] sm:$0xff]  ;;  %v105_v15 = vadd.f32 %v931_v10, %v929_v9  ;;  %vm263_vm6 = vcmask 458112   ;;  %vm267_vm7 = vcmask 523712   ;;  %s886_s1 = smov [#allocation7]  }
  0x10   :  { %79 = vadd.xlane.f32.xlu0 %v78_v7  ;;  %1294 = vst [vmem:[#allocation12_spill] sm:$0xff] %v933_v11  ;;  %v939_v14 = vld [vmem:[#allocation2 + $0xa8] sm:$0xff]  ;;  %v81_v16 = vadd.f32 %v935_v12, %v933_v11  ;;  %v947_v18 = vld [vmem:[#allocation2 + $0xb0] sm:$0xff]  ;;  %v949_v19 = vld [vmem:[#allocation2 + $0xb8] sm:$0xff]  ;;  %v1011_v53 = vadd.s32 4294967280, %v1008_v52  ;;  %v1014_v54 = vadd.s32 4294967288, %v1008_v52 }
  0x11   :  { %85 = vadd.xlane.f32.xlu2 %v84_v8  ;;  %1295 = vst [vmem:[#allocation13_spill] sm:$0xff] %v935_v12  ;;  %v108_v17 = vadd.f32 %v939_v14, %v937_v13  ;;  %v951_v20 = vld [vmem:[#allocation2 + $0x30] sm:$0xff]  ;;  %v953_v21 = vld [vmem:[#allocation2 + $0x38] sm:$0xff]  ;;  %v955_v22 = vld [vmem:[#allocation2 + $0x40] sm:$0xff]  ;;  %v111_v24 = vadd.f32 %v949_v19, %v947_v18  ;;  %vm284_vm8 = vcmask 1041409   ;;  %vm318_vm9 = vcmask 1043456  }
  0x12   :  { %1296 = vst [vmem:[#allocation14_spill] sm:$0xff] %v951_v20  ;;  %v957_v23 = vld [vmem:[#allocation2 + $0x48] sm:$0xff]  ;;  %v87_v25 = vadd.f32 %v953_v21, %v951_v20  ;;  %v965_v27 = vld [vmem:[#allocation2 + $0x50] sm:$0xff]  ;;  %v967_v28 = vld [vmem:[#allocation2 + $0x58] sm:$0xff]  ;;  %vm314_vm10 = vcmask 31744   ;;  %vm409_vm15 = vcmask 517120  }
  0x13   :  { %1297 = vst [vmem:[#allocation15_spill] sm:$0xff] %v953_v21  ;;  %v90_v26 = vadd.f32 %v957_v23, %v955_v22  ;;  %v969_v29 = vld [vmem:[#allocation2 + $0xc0] sm:$0xff]  ;;  %v971_v30 = vld [vmem:[#allocation2 + $0xc8] sm:$0xff]  ;;  %v973_v31 = vld [vmem:[#allocation2 + $0xd0] sm:$0xff]  ;;  %v93_v33 = vadd.f32 %v967_v28, %v965_v27  ;;  %s744_s22 = sshll.u32 %s886_s1, 4  ;;  %s746_s25 = sshll.u32 %s1282_s2, 4  ;;  %s745_s22 = int_to_ptr.vmem [resolvable:$true] %s744_s22  ;;  %s747_s25 = int_to_ptr.hbm [resolvable:$true] %s746_s25 }
  0x14   :  { %1298 = vst [vmem:[#allocation16_spill] sm:$0xff] %v955_v22  ;;  %v975_v32 = vld [vmem:[#allocation2 + $0xd8] sm:$0xff]  ;;  %v114_v34 = vadd.f32 %v971_v30, %v969_v29  ;;  %v983_v36 = vld [vmem:[#allocation2 + $0xe0] sm:$0xff]  ;;  %v985_v37 = vld [vmem:[#allocation2 + $0xe8] sm:$0xff] }
  0x15   :  { %1299 = vst [vmem:[#allocation17_spill] sm:$0xff] %v957_v23  ;;  %v117_v35 = vadd.f32 %v975_v32, %v973_v31  ;;  %v987_v38 = vld [vmem:[#allocation2 + $0x60] sm:$0xff]  ;;  %v989_v39 = vld [vmem:[#allocation2 + $0x68] sm:$0xff]  ;;  %v991_v40 = vld [vmem:[#allocation2 + $0x70] sm:$0xff]  ;;  %v120_v42 = vadd.f32 %v985_v37, %v983_v36 }
  0x16   :  { %1300 = vst [vmem:[#allocation18_spill] sm:$0xff] %v965_v27  ;;  %v993_v41 = vld [vmem:[#allocation2 + $0x78] sm:$0xff]  ;;  %v96_v43 = vadd.f32 %v989_v39, %v987_v38  ;;  %v1001_v45 = vld [vmem:[#allocation2 + $0xf0] sm:$0xff] }
  0x17   :  { %106 = vadd.xlane.f32.xlu1 %v105_v15  ;;  %1301 = vst [vmem:[#allocation19_spill] sm:$0xff] %v967_v28  ;;  %v99_v44 = vadd.f32 %v993_v41, %v991_v40  ;;  %v1003_v46 = vld [vmem:[#allocation2 + $0xf8] sm:$0xff]  ;;  %v1028_v15 = vld [vmem:[#allocation5] sm:$0xff] }
  0x18   :  { %82 = vadd.xlane.f32.xlu0 %v81_v16  ;;  %v123_v47 = vadd.f32 %v1003_v46, %v1001_v45  ;;  %v1031_v16 = vadd.s32 4294967272, %v1008_v52  ;;  %760 = vmatpush.xpose.msk.msra.mxu0 %vm286_vm2, %v1028_v15 }
  0x19   :  { %109 = vadd.xlane.f32.xlu2 %v108_v17 }
  0x1f   :  { %112 = vadd.xlane.f32.xlu1 %v111_v24  ;;  %v1035_v24 = vadd.s32 4294967264, %v1008_v52 }
  0x20   :  { %88 = vadd.xlane.f32.xlu0 %v87_v25 }
  0x21   :  { %91 = vadd.xlane.f32.xlu2 %v90_v26  ;;  %v126_v26 = vmul.f32 %v915_v2, %v915_v2 }
  0x27   :  { %94 = vadd.xlane.f32.xlu1 %v93_v33  ;;  %v127_v33 = vmul.f32 %v919_v4, %v919_v4 }
  0x28   :  { %115 = vadd.xlane.f32.xlu0 %v114_v34  ;;  %v128_v34 = vmul.f32 %v933_v11, %v933_v11  ;;  %v132_v11 = vmul.f32 %v951_v20, %v951_v20 }
  0x29   :  { %118 = vadd.xlane.f32.xlu2 %v117_v35  ;;  %v129_v35 = vmul.f32 %v935_v12, %v935_v12  ;;  %v1058_v12 = vadd.s32 4294967256, %v1008_v52 }
  0x2f   :  { %121 = vadd.xlane.f32.xlu1 %v120_v42 }
  0x30   :  { %97 = vadd.xlane.f32.xlu0 %v96_v43 }
  0x31   :  { %100 = vadd.xlane.f32.xlu2 %v99_v44 }
  0x38   :  { %124 = vadd.xlane.f32.xlu0 %v123_v47  ;;  %v130_v47 = vmul.f32 %v921_v5, %v921_v5 }
  0x82   :  { %v104_v49 = vpop.xlane.xlu1 %103 }
  0x83   :  { %v80_v50 = vpop.xlane.xlu0 %79  ;;  %v391_v55 = vperm.slane %v104_v49, %v1008_v52  ;;  %v214_v4 = vmul.f32 0.00390625, %v104_v49 }
  0x84   :  { %v86_v51 = vpop.xlane.xlu2 %85  ;;  %v376_v61 = vperm.slane %v80_v50, %v1008_v52 }
  0x85   :  { %v379_v57 = vperm.slane %v86_v51, %v1011_v53 }
  0x8a   :  { %v107_v56 = vpop.xlane.xlu1 %106 }
  0x8b   :  { %v392_v58 = vperm.slane %v107_v56, %v1014_v54  ;;  %v83_v59 = vpop.xlane.xlu0 %82 }
  0x8c   :  { %v1019_v60 = vpop.xlane.xlu2 %109  ;;  %v377_v62 = vperm.slane %v83_v59, %v1014_v54 }
  0x8d   :  { %v394_v63 = vperm.slane %v1019_v60, %v1011_v53  ;;  %v393_v3 = vsel %vm243_vm0, %v392_v58, %v391_v55  ;;  %v131_v55 = vmul.f32 %v923_v6, %v923_v6 }
  0x8e   :  { %v378_v7 = vsel %vm243_vm0, %v377_v62, %v376_v61  ;;  %v158_v62 = vadd.f32 %v127_v33, %v126_v26  ;;  %v134_v26 = vmul.f32 %v955_v22, %v955_v22  ;;  %v206_v33 = vmul.f32 0.00390625, %v80_v50 }
  0x8f   :  { %v395_v8 = vsel %vm247_vm1, %v394_v63, %v393_v3  ;;  %v380_v17 = vsel %vm247_vm1, %v379_v57, %v378_v7  ;;  %v161_v63 = vadd.f32 %v129_v35, %v128_v34  ;;  %v164_v7 = vadd.f32 %v131_v55, %v130_v47 }
  0x90   :  { %159 = vadd.xlane.f32.xlu1 %v158_v62  ;;  %v207_v34 = vmul.f32 0.00390625, %v83_v59  ;;  %v136_v35 = vmul.f32 %v965_v27, %v965_v27  ;;  %v215_v47 = vmul.f32 0.00390625, %v107_v56  ;;  %v1073_v55 = vadd.s32 4294967248, %v1008_v52 }
  0x91   :  { %162 = vadd.xlane.f32.xlu2 %v161_v63  ;;  %165 = vadd.xlane.f32.xlu0 %v164_v7  ;;  %v269_v59 = vperm.slane %v214_v4, %v1008_v52  ;;  %v240_v56 = vperm.slane %v206_v33, %v1008_v52  ;;  %v139_v4 = vmul.f32 %v989_v39, %v989_v39 }
  0x92   :  { %v113_v25 = vpop.xlane.xlu1 %112  ;;  %v142_v33 = vmul.f32 %v911_v0, %v911_v0 }
  0x93   :  { %v396_v42 = vperm.slane %v113_v25, %v1031_v16  ;;  %v89_v43 = vpop.xlane.xlu0 %88 }
  0x94   :  { %v92_v44 = vpop.xlane.xlu2 %91  ;;  %v381_v57 = vperm.slane %v89_v43, %v1031_v16  ;;  %v209_v22 = vmul.f32 0.00390625, %v89_v43  ;;  %v141_v43 = vmul.f32 %v993_v41, %v993_v41 }
  0x95   :  { %v383_v58 = vperm.slane %v92_v44, %v1035_v24  ;;  %v397_v61 = vsel %vm251_vm3, %v396_v42, %v395_v8  ;;  %v133_v8 = vmul.f32 %v953_v21, %v953_v21  ;;  %v137_v42 = vmul.f32 %v967_v28, %v967_v28 }
  0x96   :  { %v382_v3 = vsel %vm251_vm3, %v381_v57, %v380_v17  ;;  %v135_v17 = vmul.f32 %v957_v23, %v957_v23  ;;  %v208_v57 = vmul.f32 0.00390625, %v86_v51  ;;  %v242_v23 = vperm.slane %v207_v34, %v1014_v54 }
  0x97   :  { %v384_v48 = vsel %vm255_vm4, %v383_v58, %v382_v3  ;;  %v167_v3 = vadd.f32 %v133_v8, %v132_v11  ;;  %v173_v28 = vadd.f32 %v137_v42, %v136_v35  ;;  %v270_v21 = vperm.slane %v215_v47, %v1014_v54 }
  0x98   :  { %v170_v50 = vadd.f32 %v135_v17, %v134_v26  ;;  %v138_v11 = vmul.f32 %v987_v38, %v987_v38  ;;  %v216_v8 = vmul.f32 0.00390625, %v1019_v60  ;;  %v217_v17 = vmul.f32 0.00390625, %v113_v25 }
  0x99   :  { %168 = vadd.xlane.f32.xlu1 %v167_v3  ;;  %174 = vadd.xlane.f32.xlu0 %v173_v28  ;;  %v143_v60 = vmul.f32 %v913_v1, %v913_v1  ;;  %v210_v34 = vmul.f32 0.00390625, %v92_v44  ;;  %v1104_v47 = vadd.s32 4294967240, %v1008_v52  ;;  %v271_v25 = vsel %vm243_vm0, %v270_v21, %v269_v59 }
  0x9a   :  { %v95_v49 = vpop.xlane.xlu1 %94  ;;  %171 = vadd.xlane.f32.xlu2 %v170_v50  ;;  %v272_v28 = vperm.slane %v216_v8, %v1011_v53  ;;  %v274_v50 = vperm.slane %v217_v17, %v1031_v16  ;;  %v147_v17 = vmul.f32 %v939_v14, %v939_v14 }
  0x9b   :  { %v385_v58 = vperm.slane %v95_v49, %v1058_v12  ;;  %v116_v62 = vpop.xlane.xlu0 %115  ;;  %v211_v35 = vmul.f32 0.00390625, %v95_v49  ;;  %v182_v49 = vadd.f32 %v143_v60, %v142_v33 }
  0x9c   :  { %v119_v63 = vpop.xlane.xlu2 %118  ;;  %v398_v7 = vperm.slane %v116_v62, %v1035_v24  ;;  %v218_v42 = vmul.f32 0.00390625, %v116_v62  ;;  %v273_v33 = vsel %vm247_vm1, %v272_v28, %v271_v25 }
  0x9d   :  { %v400_v27 = vperm.slane %v119_v63, %v1058_v12  ;;  %v386_v51 = vsel %vm259_vm5, %v385_v58, %v384_v48  ;;  %v140_v48 = vmul.f32 %v991_v40, %v991_v40  ;;  %v176_v58 = vadd.f32 %v139_v4, %v138_v11 }
  0x9e   :  { %v399_v20 = vsel %vm255_vm4, %v398_v7, %v397_v61  ;;  %v246_v61 = vperm.slane %v208_v57, %v1011_v53  ;;  %v254_v7 = vperm.slane %v210_v34, %v1035_v24  ;;  %v258_v8 = vperm.slane %v211_v35, %v1058_v12 }
  0x9f   :  { %v1090_v26 = vsel %vm259_vm5, %v400_v27, %v399_v20  ;;  %v244_v20 = vsel %vm243_vm0, %v242_v23, %v240_v56  ;;  %v250_v27 = vperm.slane %v209_v22, %v1031_v16  ;;  %v179_v3 = vadd.f32 %v141_v43, %v140_v48 }
  0xa0   :  { %v248_v23 = vsel %vm247_vm1, %v246_v61, %v244_v20  ;;  %v219_v56 = vmul.f32 0.00390625, %v119_v63  ;;  %v276_v11 = vperm.slane %v218_v42, %v1035_v24  ;;  %v144_v48 = vmul.f32 %v929_v9, %v929_v9 }
  0xa1   :  { %v252_v62 = vsel %vm251_vm3, %v250_v27, %v248_v23  ;;  %177 = vadd.xlane.f32.xlu1 %v176_v58  ;;  %v145_v61 = vmul.f32 %v931_v10, %v931_v10  ;;  %v146_v63 = vmul.f32 %v937_v13, %v937_v13  ;;  %183 = vadd.xlane.f32.xlu0 %v182_v49 }
  0xa2   :  { %v122_v22 = vpop.xlane.xlu1 %121  ;;  %180 = vadd.xlane.f32.xlu2 %v179_v3  ;;  %v149_v20 = vmul.f32 %v949_v19, %v949_v19  ;;  %v275_v27 = vsel %vm251_vm3, %v274_v50, %v273_v33  ;;  %v278_v34 = vperm.slane %v219_v56, %v1058_v12 }
  0xa3   :  { %v98_v57 = vpop.xlane.xlu0 %97  ;;  %v220_v43 = vmul.f32 0.00390625, %v122_v22  ;;  %v402_v35 = vperm.slane %v122_v22, %v1073_v55  ;;  %v277_v25 = vsel %vm255_vm4, %v276_v11, %v275_v27  ;;  %v188_v50 = vadd.f32 %v147_v17, %v146_v63 }
  0xa4   :  { %v387_v44 = vperm.slane %v98_v57, %v1073_v55  ;;  %v212_v21 = vmul.f32 0.00390625, %v98_v57  ;;  %v101_v59 = vpop.xlane.xlu2 %100  ;;  %v256_v57 = vsel %vm255_vm4, %v254_v7, %v252_v62  ;;  %v279_v62 = vsel %vm259_vm5, %v278_v34, %v277_v25 }
  0xa5   :  { %v213_v60 = vmul.f32 0.00390625, %v101_v59  ;;  %v389_v28 = vperm.slane %v101_v59, %v1104_v47  ;;  %v260_v58 = vsel %vm259_vm5, %v258_v8, %v256_v57  ;;  %v280_v3 = vperm.slane %v220_v43, %v1073_v55 }
  0xa6   :  { %v388_v4 = vsel %vm263_vm6, %v387_v44, %v386_v51  ;;  %v148_v51 = vmul.f32 %v947_v18, %v947_v18  ;;  %v262_v42 = vperm.slane %v212_v21, %v1073_v55  ;;  %v185_v44 = vadd.f32 %v145_v61, %v144_v48 }
  0xa7   :  { %v266_v49 = vperm.slane %v213_v60, %v1104_v47  ;;  %v403_v7 = vsel %vm263_vm6, %v402_v35, %v1090_v26  ;;  %v390_v8 = vsel %vm267_vm7, %v389_v28, %v388_v4  ;;  %v150_v43 = vmul.f32 %v969_v29, %v969_v29 }
  0xa8   :  { %v191_v21 = vadd.f32 %v149_v20, %v148_v51  ;;  %v264_v59 = vsel %vm263_vm6, %v262_v42, %v260_v58  ;;  %v281_v61 = vsel %vm263_vm6, %v280_v3, %v279_v62  ;;  %v151_v26 = vmul.f32 %v971_v30, %v971_v30 }
  0xa9   :  { %186 = vadd.xlane.f32.xlu1 %v185_v44  ;;  %v268_v17 = vsel %vm267_vm7, %v266_v49, %v264_v59  ;;  %v152_v51 = vmul.f32 %v973_v31, %v973_v31  ;;  %v153_v20 = vmul.f32 %v975_v32, %v975_v32  ;;  %v313_v27 = vrot.slane %v1028_v15, 4 }
  0xaa   :  { %189 = vadd.xlane.f32.xlu2 %v188_v50  ;;  %192 = vadd.xlane.f32.xlu0 %v191_v21  ;;  %v194_v60 = vadd.f32 %v151_v26, %v150_v43  ;;  %v154_v34 = vmul.f32 %v983_v36, %v983_v36  ;;  %v155_v35 = vmul.f32 %v985_v37, %v985_v37 }
  0xab   :  { %v125_v23 = vpop.xlane.xlu0 %124  ;;  %v197_v42 = vadd.f32 %v153_v20, %v152_v51  ;;  %v156_v57 = vmul.f32 %v1001_v45, %v1001_v45  ;;  %762 = vmatpush.msk.msra.mxu1 %vm318_vm9, %v313_v27  ;;  %v157_v28 = vmul.f32 %v1003_v46, %v1003_v46 }
  0xac   :  { %v221_v56 = vmul.f32 0.00390625, %v125_v23  ;;  %v404_v22 = vperm.slane %v125_v23, %v1104_v47  ;;  %v200_v25 = vadd.f32 %v155_v35, %v154_v34 }
  0xad   :  { %v203_v58 = vadd.f32 %v157_v28, %v156_v57 }
  0xae   :  { %v282_v11 = vperm.slane %v221_v56, %v1104_v47  ;;  %v405_v48 = vsel %vm267_vm7, %v404_v22, %v403_v7 }
  0xaf   :  { %v1151_v63 = vsel %vm284_vm8, %v405_v48, %v390_v8 }
  0xb0   :  { %v283_v4 = vsel %vm267_vm7, %v282_v11, %v281_v61 }
  0xb1   :  { %v285_v33 = vsel %vm284_vm8, %v283_v4, %v268_v17  ;;  %195 = vadd.xlane.f32.xlu1 %v194_v60 }
  0xb2   :  { %761 = vmatmul.msk.f32.vlgmr.msra.gmra.mxu0 %vm286_vm2, %v285_v33  ;;  %198 = vadd.xlane.f32.xlu2 %v197_v42 }
  0xb3   :  { %201 = vadd.xlane.f32.xlu0 %v200_v25 }
  0xb9   :  { %204 = vadd.xlane.f32.xlu1 %v203_v58 }
 0x103   :  { %v160_v23 = vpop.xlane.xlu1 %159 }
 0x104   :  { %v163_v44 = vpop.xlane.xlu2 %162  ;;  %v166_v50 = vpop.xlane.xlu0 %165  ;;  %v434_v43 = vperm.slane %v160_v23, %v1008_v52 }
 0x105   :  { %v435_v61 = vperm.slane %v163_v44, %v1014_v54  ;;  %v437_v33 = vperm.slane %v166_v50, %v1011_v53 }
 0x107   :  { %v436_v20 = vsel %vm243_vm0, %v435_v61, %v434_v43 }
 0x10c   :  { %v169_v49 = vpop.xlane.xlu1 %168  ;;  %v175_v22 = vpop.xlane.xlu0 %174 }
 0x10d   :  { %v172_v56 = vpop.xlane.xlu2 %171  ;;  %v439_v42 = vperm.slane %v169_v49, %v1031_v16 }
 0x10e   :  { %v441_v25 = vperm.slane %v172_v56, %v1035_v24 }
 0x114   :  { %v178_v21 = vpop.xlane.xlu1 %177  ;;  %v184_v7 = vpop.xlane.xlu0 %183 }
 0x115   :  { %v181_v62 = vpop.xlane.xlu2 %180  ;;  %v449_v26 = vperm.slane %v184_v7, %v1008_v52  ;;  %v438_v52 = vsel %vm247_vm1, %v437_v33, %v436_v20  ;;  %v445_v56 = vperm.slane %v178_v21, %v1073_v55 }
 0x116   :  { %v440_v58 = vsel %vm251_vm3, %v439_v42, %v438_v52 }
 0x117   :  { %v442_v50 = vsel %vm255_vm4, %v441_v25, %v440_v58  ;;  %v1302_v25 = vlaneseq }
 0x11c   :  { %v187_v59 = vpop.xlane.xlu1 %186 }
 0x11d   :  { %v190_v48 = vpop.xlane.xlu2 %189  ;;  %v450_v17 = vperm.slane %v187_v59, %v1014_v54  ;;  %v193_v4 = vpop.xlane.xlu0 %192 }
 0x11e   :  { %v452_v60 = vperm.slane %v190_v48, %v1011_v53  ;;  %v454_v57 = vperm.slane %v193_v4, %v1031_v16 }
 0x11f   :  { %v451_v27 = vsel %vm243_vm0, %v450_v17, %v449_v26 }
 0x120   :  { %v453_v54 = vsel %vm247_vm1, %v452_v60, %v451_v27 }
 0x124   :  { %v196_v34 = vpop.xlane.xlu1 %195 }
 0x125   :  { %v456_v53 = vperm.slane %v196_v34, %v1035_v24  ;;  %v199_v28 = vpop.xlane.xlu2 %198 }
 0x126   :  { %v458_v23 = vperm.slane %v199_v28, %v1058_v12  ;;  %v202_v44 = vpop.xlane.xlu0 %201 }
 0x127   :  { %v460_v24 = vperm.slane %v202_v44, %v1073_v55 }
 0x12c   :  { %v205_v59 = vpop.xlane.xlu1 %204 }
 0x12d   :  { %v462_v43 = vperm.slane %v205_v59, %v1104_v47 }
 0x12f   :  { %v309_v15 = vpop.f32.mrf.mxu0 }
 0x130   :  { %v312_v3 = vmax.f32 %v309_v15, 0.0  ;;  %v455_v15 = vsel %vm251_vm3, %v454_v57, %v453_v54 }
 0x131   :  { %v457_v49 = vsel %vm255_vm4, %v456_v53, %v455_v15  ;;  %v1205_v53 = vshrl.u32 %v1302_v25, 7 }
 0x132   :  { %763 = vmatmul.msk.f32.vlgmr.msra.gmra.mxu1 %vm314_vm10, %v312_v3  ;;  %v443_v3 = vperm.slane %v175_v22, %v1058_v12  ;;  %v447_v22 = vperm.slane %v181_v62, %v1104_v47 }
 0x133   :  { %772 = vset.pattern.permute.xlu2 %v1205_v53  ;;  %v512_v15 = vadd.s32 16, %v1205_v53 }
 0x135   :  { %774 = vset.pattern.permute.xlu1 %v512_v15 }
 0x1af   :  { %v338_v8 = vpop.f32.mrf.mxu1 }
 0x1b0   :  { %v764_v11 = vmul.f32 -1.442695, %v338_v8  ;;  %v444_v8 = vsel %vm259_vm5, %v443_v3, %v442_v50 }
 0x1b1   :  { %v446_v17 = vsel %vm263_vm6, %v445_v56, %v444_v8 }
 0x1b2   :  { %796 = vpow2.f32 %v764_v11  ;;  %v459_v11 = vsel %vm259_vm5, %v458_v23, %v457_v49  ;;  %v448_v33 = vsel %vm267_vm7, %v447_v22, %v446_v17 }
 0x1b3   :  { %v461_v21 = vsel %vm263_vm6, %v460_v24, %v459_v11 }
 0x1b4   :  { %v463_v60 = vsel %vm267_vm7, %v462_v43, %v461_v21 }
 0x1b5   :  { %v464_v27 = vsel %vm284_vm8, %v463_v60, %v448_v33 }
 0x1b8   :  { %v797_v51 = vpop.eup %796 }
 0x1b9   :  { %v344_v35 = vadd.f32 1.0, %v797_v51 }
 0x1bb   :  { %798 = vrcp.f32 %v344_v35  ;;  %v356_v12 = vand.u32 2147483648, %v344_v35  ;;  %v354_v26 = vand.u32 2147483647, %v344_v35  ;;  %vm350_vm12 = vweird.f32 %v344_v35 }
 0x1bd   :  { %v357_v55 = vor.u32 1.1754944e-38, %v356_v12  ;;  %vm355_vm14 = vcmp.eq.f32.partialorder %v354_v26, 8.507059e+37  ;;  %v77_v26 = vld [vmem:[#allocation5 + $0x8] sm:$0x3] }
 0x1c1   :  { %v799_v16 = vpop.eup %798 }
 0x1c2   :  { %v346_v7 = vmul.f32 %v799_v16, %v344_v35  ;;  %vm351_vm11 = vweird.f32 %v799_v16 }
 0x1c3   :  { %vm352_vm13 = vmor %vm350_vm12, %vm351_vm11 }
 0x1c4   :  { %v347_v48 = vsub.f32 1.0, %v346_v7 }
 0x1c6   :  { %v348_v61 = vmul.f32 %v799_v16, %v347_v48 }
 0x1c8   :  { %v349_v4 = vadd.f32 %v799_v16, %v348_v61 }
 0x1ca   :  { %v353_v51 = vsel %vm352_vm13, %v799_v16, %v349_v4 }
 0x1cb   :  { %v358_v62 = vsel %vm355_vm14, %v357_v55, %v353_v51 }
 0x1cc   :  { %v408_v47 = vmul.f32 %v1151_v63, %v358_v62  ;;  %v417_v20 = vmul.f32 %v358_v62, %v358_v62  ;;  %v1210_v63 = vadd.s32 8, %v1205_v53 }
 0x1ce   :  { %v410_v34 = vsel %vm409_vm15, %v408_v47, 0.0  ;;  %v466_v42 = vmul.f32 %v464_v27, %v417_v20  ;;  %773 = vset.pattern.permute.xlu0 %v1210_v63  ;;  %v530_v47 = vadd.s32 40, %v1205_v53  ;;  %v518_v20 = vadd.s32 24, %v1205_v53 }
 0x1cf   :  { %v411_v57 = vrot.slane %v410_v34, 4 }
 0x1d0   :  { %v467_v52 = vsel %vm409_vm15, %v466_v42, 0.0  ;;  %v536_v42 = vadd.s32 48, %v1205_v53 }
 0x1d1   :  { %v412_v35 = vadd.f32 %v411_v57, %v410_v34  ;;  %v468_v54 = vrot.slane %v467_v52, 4  ;;  %v542_v34 = vadd.s32 56, %v1205_v53 }
 0x1d3   :  { %v413_v28 = vrot.slane %v412_v35, 2  ;;  %v469_v58 = vadd.f32 %v468_v54, %v467_v52 }
 0x1d5   :  { %v414_v3 = vadd.f32 %v413_v28, %v412_v35  ;;  %v470_v23 = vrot.slane %v469_v58, 2 }
 0x1d7   :  { %v415_v44 = vrot.slane %v414_v3, 1  ;;  %v471_v16 = vadd.f32 %v470_v23, %v469_v58 }
 0x1d9   :  { %v416_v50 = vadd.f32 %v415_v44, %v414_v3  ;;  %v472_v49 = vrot.slane %v471_v16, 1 }
 0x1db   :  { %v473_v7 = vadd.f32 %v472_v49, %v471_v16  ;;  %v474_v56 = vmul.f32 0.001953125, %v416_v50 }
 0x1dd   :  { %v475_v24 = vmul.f32 0.001953125, %v473_v7  ;;  %v476_v59 = vmul.f32 %v474_v56, %v474_v56 }
 0x1df   :  { %v477_v8 = vsub.f32 %v475_v24, %v476_v59 }
 0x1e1   :  { %v478_v11 = vadd.f32 1e-05, %v477_v8 }
 0x1e3   :  { %800 = vrsqrt.f32 %v478_v11  ;;  %vm485_vm1 = vweird.f32 %v478_v11 }
 0x1e9   :  { %v801_v48 = vpop.eup %800 }
 0x1ea   :  { %v480_v22 = vmul.f32 %v801_v48, %v478_v11  ;;  %vm486_vm0 = vweird.f32 %v801_v48 }
 0x1eb   :  { %vm487_vm2 = vmor %vm485_vm1, %vm486_vm0 }
 0x1ec   :  { %v481_v12 = vmul.f32 %v801_v48, %v480_v22 }
 0x1ee   :  { %v482_v43 = vmul.f32 0.5, %v481_v12 }
 0x1f0   :  { %v483_v61 = vsub.f32 1.5, %v482_v43 }
 0x1f2   :  { %v484_v17 = vmul.f32 %v801_v48, %v483_v61 }
 0x1f4   :  { %v488_v21 = vsel %vm487_vm2, %v801_v48, %v484_v17 }
 0x1f5   :  { %v489_v4 = vmul.f32 %v488_v21, %v77_v26 }
 0x1f7   :  { %v490_v55 = vperm.slane %v489_v4, 0  ;;  %v492_v33 = vmul.f32 %v489_v4, %v474_v56 }
 0x1f9   :  { %v491_v60 = vmul.f32 %v490_v55, %v358_v62  ;;  %v524_v62 = vadd.s32 32, %v1205_v53  ;;  %v494_v57 = vrot.slane %v492_v33, 7 }
 0x1fb   :  { %v497_v51 = vperm.slane %v491_v60, 0  ;;  %v546_v27 = vperm.slane %v491_v60, 1  ;;  %v496_v52 = vsub.f32 %v77_v26, %v494_v57  ;;  %v1305_v57 = vld [vmem:[#allocation13_spill] sm:$0xff] }
 0x1fd   :  { %514 = vperm.xlu1 %774, %v497_v51   ;;  %508 = vperm.xlu0 %773, %v497_v51   ;;  %v627_v35 = vperm.slane %v496_v52, 1 }
 0x1fe   :  { %502 = vperm.xlu2 %772, %v497_v51  }
 0x205   :  { %777 = vset.pattern.permute.xlu1 %v530_v47  ;;  %780 = vset.pattern.permute.xlu0 %v1205_v53 }
 0x206   :  { %775 = vset.pattern.permute.xlu2 %v518_v20 }
 0x20d   :  { %532 = vperm.xlu1 %777, %v497_v51   ;;  %551 = vperm.xlu0 %780, %v546_v27  }
 0x20e   :  { %520 = vperm.xlu2 %775, %v497_v51  }
 0x215   :  { %779 = vset.pattern.permute.xlu1 %v542_v34  ;;  %785 = vset.pattern.permute.xlu0 %v530_v47 }
 0x216   :  { %776 = vset.pattern.permute.xlu2 %v524_v62 }
 0x21d   :  { %544 = vperm.xlu1 %779, %v497_v51   ;;  %581 = vperm.xlu0 %785, %v546_v27  }
 0x21e   :  { %526 = vperm.xlu2 %776, %v497_v51  }
 0x225   :  { %782 = vset.pattern.permute.xlu1 %v512_v15  ;;  %790 = vset.pattern.permute.xlu0 %v512_v15 }
 0x226   :  { %778 = vset.pattern.permute.xlu2 %v536_v42 }
 0x22d   :  { %563 = vperm.xlu1 %782, %v546_v27   ;;  %644 = vperm.xlu0 %790, %v627_v35  }
 0x22e   :  { %538 = vperm.xlu2 %778, %v497_v51  }
 0x235   :  { %784 = vset.pattern.permute.xlu1 %v524_v62  ;;  %795 = vset.pattern.permute.xlu0 %v542_v34 }
 0x236   :  { %781 = vset.pattern.permute.xlu2 %v1210_v63 }
 0x23d   :  { %575 = vperm.xlu1 %784, %v546_v27   ;;  %674 = vperm.xlu0 %795, %v627_v35  }
 0x23e   :  { %557 = vperm.xlu2 %781, %v546_v27  }
 0x245   :  { %787 = vset.pattern.permute.xlu1 %v542_v34 }
 0x246   :  { %783 = vset.pattern.permute.xlu2 %v518_v20 }
 0x24d   :  { %593 = vperm.xlu1 %787, %v546_v27  }
 0x24e   :  { %569 = vperm.xlu2 %783, %v546_v27  }
 0x255   :  { %789 = vset.pattern.permute.xlu1 %v1210_v63 }
 0x256   :  { %786 = vset.pattern.permute.xlu2 %v536_v42 }
 0x258   :  { %v503_v15 = vpop.permute.xlu2 %502 }
 0x25d   :  { %638 = vperm.xlu1 %789, %v627_v35  }
 0x25e   :  { %587 = vperm.xlu2 %786, %v546_v27  }
 0x265   :  { %792 = vset.pattern.permute.xlu1 %v524_v62 }
 0x266   :  { %788 = vset.pattern.permute.xlu2 %v1205_v53 }
 0x268   :  { %v521_v23 = vpop.permute.xlu2 %520 }
 0x26d   :  { %656 = vperm.xlu1 %792, %v627_v35  }
 0x26e   :  { %632 = vperm.xlu2 %788, %v627_v35  }
 0x26f   :  { %v515_v54 = vpop.permute.xlu1 %514  ;;  %v509_v25 = vpop.permute.xlu0 %508 }
 0x270   :  { %v599_v53 = vmul.f32 %v515_v54, %v921_v5  ;;  %v600_v44 = vmul.f32 %v515_v54, %v923_v6  ;;  %v598_v52 = vmul.f32 %v509_v25, %v1305_v57 }
 0x275   :  { %794 = vset.pattern.permute.xlu1 %v536_v42 }
 0x276   :  { %791 = vset.pattern.permute.xlu2 %v518_v20 }
 0x278   :  { %v1228_v49 = vpop.permute.xlu2 %526 }
 0x27d   :  { %668 = vperm.xlu1 %794, %v627_v35  }
 0x27e   :  { %650 = vperm.xlu2 %791, %v627_v35  }
 0x27f   :  { %v1222_v28 = vpop.permute.xlu1 %532  ;;  %v552_v58 = vpop.permute.xlu0 %551 }
 0x280   :  { %v611_v51 = vmul.f32 %v552_v58, %v911_v0 }
 0x286   :  { %793 = vset.pattern.permute.xlu2 %v530_v47  ;;  %v612_v47 = vmul.f32 %v552_v58, %v913_v1 }
 0x288   :  { %v1232_v48 = vpop.permute.xlu2 %538 }
 0x28e   :  { %662 = vperm.xlu2 %793, %v627_v35  }
 0x28f   :  { %v545_v63 = vpop.permute.xlu1 %544  ;;  %v1224_v3 = vpop.permute.xlu0 %581 }
 0x290   :  { %v609_v5 = vmul.f32 %v545_v63, %v991_v40  ;;  %v610_v6 = vmul.f32 %v545_v63, %v993_v41  ;;  %v595_v40 = vmul.f32 %v503_v15, %v915_v2  ;;  %v1303_v41 = vld [vmem:[#allocation11_spill] sm:$0xff]  ;;  %v1306_v63 = vld [vmem:[#allocation14_spill] sm:$0xff] }
 0x291   :  { %v596_v60 = vmul.f32 %v503_v15, %v1303_v41 }
 0x298   :  { %v558_v12 = vpop.permute.xlu2 %557 }
 0x299   :  { %v613_v2 = vmul.f32 %v558_v12, %v929_v9  ;;  %v614_v35 = vmul.f32 %v558_v12, %v931_v10 }
 0x29f   :  { %v564_v16 = vpop.permute.xlu1 %563  ;;  %v645_v50 = vpop.permute.xlu0 %644 }
 0x2a0   :  { %v615_v7 = vmul.f32 %v564_v16, %v937_v13  ;;  %v616_v56 = vmul.f32 %v564_v16, %v939_v14  ;;  %v680_v24 = vadd.f32 %v645_v50, %v599_v53  ;;  %v681_v59 = vadd.f32 %v645_v50, %v600_v44  ;;  %v1307_v44 = vld [vmem:[#allocation15_spill] sm:$0xff] }
 0x2a1   :  { %v601_v53 = vmul.f32 %v521_v23, %v1306_v63  ;;  %v602_v16 = vmul.f32 %v521_v23, %v1307_v44 }
 0x2a2   :  { %v696_v8 = vadd.f32 %v645_v50, %v615_v7  ;;  %v697_v11 = vadd.f32 %v645_v50, %v616_v56  ;;  %712 = vst [vmem:[#allocation7 + $0x20] sm:$0xff] %v680_v24 }
 0x2a3   :  { %713 = vst [vmem:[#allocation7 + $0x28] sm:$0xff] %v681_v59  ;;  %v1308_v59 = vld [vmem:[#allocation16_spill] sm:$0xff] }
 0x2a4   :  { %728 = vst [vmem:[#allocation7 + $0xa0] sm:$0xff] %v696_v8  ;;  %v603_v8 = vmul.f32 %v1228_v49, %v1308_v59 }
 0x2a5   :  { %729 = vst [vmem:[#allocation7 + $0xa8] sm:$0xff] %v697_v11  ;;  %v1309_v11 = vld [vmem:[#allocation17_spill] sm:$0xff] }
 0x2a8   :  { %v570_v61 = vpop.permute.xlu2 %569 }
 0x2a9   :  { %v618_v9 = vmul.f32 %v570_v61, %v949_v19 }
 0x2af   :  { %v675_v22 = vpop.permute.xlu0 %674  ;;  %v576_v14 = vpop.permute.xlu1 %575 }
 0x2b0   :  { %v690_v43 = vadd.f32 %v675_v22, %v609_v5  ;;  %v691_v13 = vadd.f32 %v675_v22, %v610_v6  ;;  %v604_v5 = vmul.f32 %v1228_v49, %v1309_v11  ;;  %v619_v23 = vmul.f32 %v576_v14, %v969_v29 }
 0x2b1   :  { %v621_v29 = vmul.f32 %v1224_v3, %v973_v31 }
 0x2b2   :  { %722 = vst [vmem:[#allocation7 + $0x70] sm:$0xff] %v690_v43 }
 0x2b3   :  { %723 = vst [vmem:[#allocation7 + $0x78] sm:$0xff] %v691_v13  ;;  %v1310_v13 = vld [vmem:[#allocation18_spill] sm:$0xff] }
 0x2b8   :  { %v1236_v17 = vpop.permute.xlu2 %587 }
 0x2b9   :  { %v623_v31 = vmul.f32 %v1236_v17, %v983_v36 }
 0x2bf   :  { %v594_v26 = vpop.permute.xlu1 %593 }
 0x2c0   :  { %v625_v21 = vmul.f32 %v594_v26, %v1001_v45  ;;  %v626_v4 = vmul.f32 %v594_v26, %v1003_v46  ;;  %v1304_v45 = vld [vmem:[#allocation12_spill] sm:$0xff]  ;;  %v1311_v26 = vld [vmem:[#allocation19_spill] sm:$0xff] }
 0x2c1   :  { %v597_v46 = vmul.f32 %v509_v25, %v1304_v45  ;;  %v617_v25 = vmul.f32 %v570_v61, %v947_v18  ;;  %v620_v18 = vmul.f32 %v576_v14, %v971_v30  ;;  %v605_v61 = vmul.f32 %v1222_v28, %v1310_v13 }
 0x2c2   :  { %v706_v55 = vadd.f32 %v675_v22, %v625_v21  ;;  %v707_v33 = vadd.f32 %v675_v22, %v626_v4  ;;  %v606_v49 = vmul.f32 %v1222_v28, %v1311_v26  ;;  %v622_v30 = vmul.f32 %v1224_v3, %v975_v32 }
 0x2c3   :  { %v608_v28 = vmul.f32 %v1232_v48, %v989_v39  ;;  %v624_v32 = vmul.f32 %v1236_v17, %v985_v37 }
 0x2c4   :  { %738 = vst [vmem:[#allocation7 + $0xf0] sm:$0xff] %v706_v55 }
 0x2c5   :  { %739 = vst [vmem:[#allocation7 + $0xf8] sm:$0xff] %v707_v33 }
 0x2c8   :  { %v633_v20 = vpop.permute.xlu2 %632 }
 0x2c9   :  { %v676_v27 = vadd.f32 %v633_v20, %v595_v40  ;;  %v677_v34 = vadd.f32 %v633_v20, %v596_v60  ;;  %v692_v62 = vadd.f32 %v633_v20, %v611_v51  ;;  %v693_v42 = vadd.f32 %v633_v20, %v612_v47 }
 0x2ca   :  { %v607_v40 = vmul.f32 %v1232_v48, %v987_v38 }
 0x2cb   :  { %708 = vst [vmem:[#allocation7] sm:$0xff] %v676_v27 }
 0x2cc   :  { %709 = vst [vmem:[#allocation7 + $0x8] sm:$0xff] %v677_v34 }
 0x2cd   :  { %724 = vst [vmem:[#allocation7 + $0x80] sm:$0xff] %v692_v62 }
 0x2ce   :  { %725 = vst [vmem:[#allocation7 + $0x88] sm:$0xff] %v693_v42 }
 0x2cf   :  { %v639_v0 = vpop.permute.xlu1 %638 }
 0x2d0   :  { %v678_v54 = vadd.f32 %v639_v0, %v597_v46  ;;  %v679_v1 = vadd.f32 %v639_v0, %v598_v52  ;;  %v694_v58 = vadd.f32 %v639_v0, %v613_v2  ;;  %v695_v15 = vadd.f32 %v639_v0, %v614_v35 }
 0x2d2   :  { %710 = vst [vmem:[#allocation7 + $0x10] sm:$0xff] %v678_v54 }
 0x2d3   :  { %711 = vst [vmem:[#allocation7 + $0x18] sm:$0xff] %v679_v1 }
 0x2d4   :  { %726 = vst [vmem:[#allocation7 + $0x90] sm:$0xff] %v694_v58 }
 0x2d5   :  { %727 = vst [vmem:[#allocation7 + $0x98] sm:$0xff] %v695_v15 }
 0x2d8   :  { %v651_v50 = vpop.permute.xlu2 %650 }
 0x2d9   :  { %v682_v7 = vadd.f32 %v651_v50, %v601_v53  ;;  %v683_v10 = vadd.f32 %v651_v50, %v602_v16  ;;  %v698_v56 = vadd.f32 %v651_v50, %v617_v25  ;;  %v699_v24 = vadd.f32 %v651_v50, %v618_v9 }
 0x2db   :  { %714 = vst [vmem:[#allocation7 + $0x30] sm:$0xff] %v682_v7 }
 0x2dc   :  { %715 = vst [vmem:[#allocation7 + $0x38] sm:$0xff] %v683_v10 }
 0x2dd   :  { %730 = vst [vmem:[#allocation7 + $0xb0] sm:$0xff] %v698_v56 }
 0x2de   :  { %731 = vst [vmem:[#allocation7 + $0xb8] sm:$0xff] %v699_v24 }
 0x2df   :  { %v657_v19 = vpop.permute.xlu1 %656 }
 0x2e0   :  { %v684_v6 = vadd.f32 %v657_v19, %v603_v8  ;;  %v685_v22 = vadd.f32 %v657_v19, %v604_v5  ;;  %v700_v12 = vadd.f32 %v657_v19, %v619_v23  ;;  %v701_v43 = vadd.f32 %v657_v19, %v620_v18 }
 0x2e2   :  { %716 = vst [vmem:[#allocation7 + $0x40] sm:$0xff] %v684_v6 }
 0x2e3   :  { %717 = vst [vmem:[#allocation7 + $0x48] sm:$0xff] %v685_v22 }
 0x2e4   :  { %732 = vst [vmem:[#allocation7 + $0xc0] sm:$0xff] %v700_v12 }
 0x2e5   :  { %733 = vst [vmem:[#allocation7 + $0xc8] sm:$0xff] %v701_v43 }
 0x2e8   :  { %v663_v14 = vpop.permute.xlu2 %662 }
 0x2e9   :  { %v686_v21 = vadd.f32 %v663_v14, %v605_v61  ;;  %v687_v4 = vadd.f32 %v663_v14, %v606_v49  ;;  %v702_v55 = vadd.f32 %v663_v14, %v621_v29  ;;  %v703_v33 = vadd.f32 %v663_v14, %v622_v30 }
 0x2eb   :  { %718 = vst [vmem:[#allocation7 + $0x50] sm:$0xff] %v686_v21 }
 0x2ec   :  { %719 = vst [vmem:[#allocation7 + $0x58] sm:$0xff] %v687_v4 }
 0x2ed   :  { %734 = vst [vmem:[#allocation7 + $0xd0] sm:$0xff] %v702_v55 }
 0x2ee   :  { %735 = vst [vmem:[#allocation7 + $0xd8] sm:$0xff] %v703_v33 }
 0x2ef   :  { %v669_v3 = vpop.permute.xlu1 %668 }
 0x2f0   :  { %v688_v41 = vadd.f32 %v669_v3, %v607_v40  ;;  %v689_v60 = vadd.f32 %v669_v3, %v608_v28  ;;  %v704_v51 = vadd.f32 %v669_v3, %v623_v31  ;;  %v705_v38 = vadd.f32 %v669_v3, %v624_v32 }
 0x2f2   :  { %720 = vst [vmem:[#allocation7 + $0x60] sm:$0xff] %v688_v41 }
 0x2f3   :  { %721 = vst [vmem:[#allocation7 + $0x68] sm:$0xff] %v689_v60 }
 0x2f4   :  { %736 = vst [vmem:[#allocation7 + $0xe0] sm:$0xff] %v704_v51 }
 0x2f5   :  { %737 = vst [vmem:[#allocation7 + $0xe8] sm:$0xff] %v705_v38 }
 0x2f6   :  { %752 = dma.vmem_to_hbm [thread:$0]  %s745_s22, 4096, %s747_s25, [#allocation4], %s881_s17, %s881_s17, %s882_s18  }
 0x2f7   :  { %878 = dma.done.wait [#allocation4], 4096  }
 0x2f8   :  { %879 = vsyncadd [#allocation4], 4294963200 }
 0x2f9   :  { %757 = vsyncpa [#allocation3], 1 }
 0x2fa   :  { %758 = vsyncpa [#allocation6], 1 }
 0x2fb   :  { %759 = vsyncpa [#allocation4], 1 }

</bundles_post_ra>
